<compile_context>
chip_gen: v7x
topology: tpu7x:2x2x1
jax: 0.10.0
libtpu: 0.0.40
codegen_flags: <defaults>
</compile_context>

<pallas_src>
import numpy as np
import jax
import jax.numpy as jnp
from jax.experimental import pallas as pl
from jax.experimental.pallas import tpu as pltpu

N_FEATURES = 18            # len(CFG['features'])
N_TRACK_CH = 4             # track_features channels
N_TRACK_LEN = 12           # len(CFG['track_features_y_2'])
CONV_K = 5                 # Conv1d kernel size
CONV_OUT_LEN = N_TRACK_LEN - CONV_K + 1   # 8
OUT_FEATURES = 20          # CFG['out_features']
MLP_HIDDEN = 32
TRACK_HIDDEN = 32
LN_EPS = 1e-5

TB = 8                       # batch tile (multiple of 8 sublanes)
IMG_BUF_BYTES = 10 << 20     # per pipeline buffer budget; x2 buffers stays << v7x 64 MiB

# ---- row offsets inside the packed parameter block P1 (all rows are 32 wide) ----
_R_MLP_W = 0
_R_MLP_B = N_FEATURES                      # 18
_R_LN_G = _R_MLP_B + 1                     # 19
_R_LN_B = _R_LN_G + 1                      # 20
_R_BTRK = _R_LN_B + 1                      # 21
_R_FCF = _R_BTRK + 1                       # 22
_R_FCT = _R_FCF + 1                        # 23
_R_WTRK = _R_FCT + 1                       # 24
_R_BIAS = _R_WTRK + N_TRACK_CH * N_TRACK_LEN   # 72
P1_ROWS = _R_BIAS + 1                      # 73


def _round_up(x, m):
    return ((x + m - 1) // m) * m


def nflnet_kernel(img_ref, feat_ref, trk_ref, p1_ref, wfold_ref, out_ref, acc_ref):
    f32 = jnp.float32
    s = pl.program_id(1)

    @pl.when(s == 0)
    def _():
        acc_ref[...] = jnp.zeros_like(acc_ref)

    # ---- image branch: per-(b, c) spatial sum.  Lane reduction = VPU adds across
    # vregs + one XLU cross-lane reduce; no MXU / MRF traffic, no per-step constants.
    acc_ref[...] += jnp.sum(img_ref[...].astype(f32), axis=-1, keepdims=True)

    @pl.when(s == pl.num_programs(1) - 1)
    def _():
        # backbone GAP head + fc slice + 1/HW mean folded into a block-diagonal
        # (tb, tb*C) weight -> one tiny MXU dot per batch tile.
        img_out = jnp.dot(wfold_ref[...], acc_ref[...],
                          preferred_element_type=f32)                         # (tb, 1)

        # feature MLP: Linear(18,32) -> LayerNorm(32) -> ReLU (dropout = eval identity)
        h = jnp.dot(feat_ref[...], p1_ref[_R_MLP_W:_R_MLP_B, :],
                    preferred_element_type=f32) + p1_ref[_R_MLP_B:_R_MLP_B + 1, :]
        mu = jnp.mean(h, axis=-1, keepdims=True)
        var = jnp.mean(jnp.square(h - mu), axis=-1, keepdims=True)
        h = (h - mu) * jax.lax.rsqrt(var + LN_EPS)
        h = jnp.maximum(h * p1_ref[_R_LN_G:_R_LN_G + 1, :]
                        + p1_ref[_R_LN_B:_R_LN_B + 1, :], 0.0)                # (tb, 32)

        # track branch: Conv1d(4->1,5) (im2col) folded with Linear(8,32): one matmul + ReLU
        t = jnp.maximum(jnp.dot(trk_ref[...], p1_ref[_R_WTRK:_R_BIAS, :],
                                preferred_element_type=f32)
                        + p1_ref[_R_BTRK:_R_BTRK + 1, :], 0.0)                # (tb, 32)

        # final fc: the two (32,1) slices are stored transposed as rows -> VPU mul + reduce
        feat_term = jnp.sum(h * p1_ref[_R_FCF:_R_FCF + 1, :], axis=-1, keepdims=True)
        trk_term = jnp.sum(t * p1_ref[_R_FCT:_R_FCT + 1, :], axis=-1, keepdims=True)
        bias = p1_ref[_R_BIAS:_R_BIAS + 1, 0:1]     # = bb_b @ fcw_img + fc_b

        out_ref[...] = img_out + feat_term + trk_term + bias


def init_params(key, inp_channels):
    """Deterministic parameter init (PyTorch-style uniform +-1/sqrt(fan_in))."""
    ks = jax.random.split(key, 10)

    def u(k, shape, fan_in):
        b = 1.0 / float(np.sqrt(fan_in))
        return jax.random.uniform(k, shape, jnp.float32, -b, b)

    p = {}
    # stand-in backbone head (GAP -> Linear(C, 20))
    p["bb_w"] = u(ks[0], (inp_channels, OUT_FEATURES), inp_channels)
    p["bb_b"] = u(ks[1], (1, OUT_FEATURES), inp_channels)
    # mlp: Linear(18, 32) + LayerNorm(32)
    p["mlp_w"] = u(ks[2], (N_FEATURES, MLP_HIDDEN), N_FEATURES)
    p["mlp_b"] = u(ks[3], (1, MLP_HIDDEN), N_FEATURES)
    p["ln_g"] = jnp.ones((1, MLP_HIDDEN), jnp.float32)
    p["ln_b"] = jnp.zeros((1, MLP_HIDDEN), jnp.float32)
    # conv1: Conv1d(4, 1, 5) + Linear(8, 32)
    fan_conv = N_TRACK_CH * CONV_K
    p["conv_w"] = u(ks[4], (N_TRACK_CH, CONV_K), fan_conv)
    p["conv_b"] = u(ks[5], (1,), fan_conv)
    p["lin2_w"] = u(ks[6], (CONV_OUT_LEN, TRACK_HIDDEN), CONV_OUT_LEN)
    p["lin2_b"] = u(ks[7], (1, TRACK_HIDDEN), CONV_OUT_LEN)
    # fc: Linear(20 + 32 + 32, 1)
    fan_fc = OUT_FEATURES + MLP_HIDDEN + TRACK_HIDDEN
    p["fc_w"] = u(ks[8], (fan_fc, 1), fan_fc)
    p["fc_b"] = u(ks[9], (1, 1), fan_fc)
    return p


def _pack_params(params, tb, C, HW):
    """Exact algebraic folding of all small weights into two packed f32 arrays."""
    f32 = jnp.float32
    fcw = params["fc_w"].astype(f32)
    fcw_img = fcw[:OUT_FEATURES]                                   # (20, 1)
    fcw_feat = fcw[OUT_FEATURES:OUT_FEATURES + MLP_HIDDEN]         # (32, 1)
    fcw_trk = fcw[OUT_FEATURES + MLP_HIDDEN:]                      # (32, 1)

    # backbone head folded into the fc slice; 1/HW mean folded in; block-diag over tb
    w_img_fold = (params["bb_w"].astype(f32) @ fcw_img)[:, 0] / float(HW)       # (C,)
    w_fold = jnp.kron(jnp.eye(tb, dtype=f32), w_img_fold[None, :])              # (tb, tb*C)
    bias_total = params["bb_b"].astype(f32) @ fcw_img + params["fc_b"].astype(f32)  # (1,1)

    # Conv1d as im2col matmul, folded with the following Linear(8, 32)
    cw = params["conv_w"].astype(f32)
    cols = []
    for j in range(CONV_OUT_LEN):
        col = jnp.zeros((N_TRACK_CH, N_TRACK_LEN), f32).at[:, j:j + CONV_K].set(cw)
        cols.append(col.reshape(-1))
    w_im2col = jnp.stack(cols, axis=1)                                           # (48, 8)
    w_track = w_im2col @ params["lin2_w"].astype(f32)                            # (48, 32)
    b_track = params["lin2_b"].astype(f32) + params["conv_b"][0] * jnp.sum(
        params["lin2_w"].astype(f32), axis=0, keepdims=True)                     # (1, 32)

    bias_row = jnp.zeros((1, MLP_HIDDEN), f32).at[0, 0].set(bias_total[0, 0])

    p1 = jnp.concatenate([
        params["mlp_w"].astype(f32),    # rows  0:18
        params["mlp_b"].astype(f32),    # row  18
        params["ln_g"].astype(f32),     # row  19
        params["ln_b"].astype(f32),     # row  20
        b_track,                        # row  21
        fcw_feat.T,                     # row  22
        fcw_trk.T,                      # row  23
        w_track,                        # rows 24:72
        bias_row,                       # row  72
    ], axis=0)                          # (73, 32)
    assert p1.shape == (P1_ROWS, MLP_HIDDEN)
    return p1, w_fold


def nflnet_forward(image, features, track, params):
    f32 = jnp.float32
    B, C, H, W = image.shape
    HW = H * W
    itemsize = jnp.dtype(image.dtype).itemsize

    # ---- batch tiling (pad only when B is not a multiple of the batch tile)
    tb = TB if B >= TB else B
    B_pad = _round_up(B, tb)

    # ---- spatial tiling: full-HW tile if a single buffer fits the budget,
    # otherwise split into large 512-lane-aligned tiles (zero pad is sum-exact).
    row_bytes = tb * C * itemsize
    if row_bytes * HW <= IMG_BUF_BYTES:
        thw, HW_pad = HW, HW
    else:
        thw = max(512, (IMG_BUF_BYTES // row_bytes) // 512 * 512)
        HW_pad = _round_up(HW, thw)

    img3 = image.reshape(B, C, HW)                      # native dtype, no astype
    if B_pad != B or HW_pad != HW:
        img3 = jnp.pad(img3, ((0, B_pad - B), (0, 0), (0, HW_pad - HW)))
    img2d = img3.reshape(B_pad * C, HW_pad)             # rows ordered (b, c)

    feat = features.astype(f32)
    trk2 = track.astype(f32).reshape(B, N_TRACK_CH * N_TRACK_LEN)
    if B_pad != B:
        feat = jnp.pad(feat, ((0, B_pad - B), (0, 0)))
        trk2 = jnp.pad(trk2, ((0, B_pad - B), (0, 0)))

    p1, w_fold = _pack_params(params, tb, C, HW)

    grid = (B_pad // tb, HW_pad // thw)

    in_specs = [
        pl.BlockSpec((tb * C, thw), lambda b, s: (b, s)),                       # image tile
        pl.BlockSpec((tb, N_FEATURES), lambda b, s: (b, 0)),                    # features
        pl.BlockSpec((tb, N_TRACK_CH * N_TRACK_LEN), lambda b, s: (b, 0)),      # track
        pl.BlockSpec(p1.shape, lambda b, s: (0, 0)),                            # packed params
        pl.BlockSpec(w_fold.shape, lambda b, s: (0, 0)),                        # folded img weight
    ]

    img_tile_bytes = tb * C * thw * itemsize
    vmem_limit = int(min(max(3 * img_tile_bytes + (4 << 20), 16 << 20), 48 << 20))

    cost = pl.CostEstimate(
        flops=int(2 * B_pad * C * HW_pad
                  + 2 * B_pad * (N_FEATURES * MLP_HIDDEN
                                 + N_TRACK_CH * N_TRACK_LEN * TRACK_HIDDEN + 128)),
        transcendentals=int(B_pad),
        bytes_accessed=int(img2d.size * itemsize + feat.size * 4 + trk2.size * 4
                           + p1.size * 4 + w_fold.size * 4 + B_pad * 4),
    )

    out = pl.pallas_call(
        nflnet_kernel,
        out_shape=jax.ShapeDtypeStruct((B_pad, 1), f32),
        grid_spec=pltpu.PrefetchScalarGridSpec(
            num_scalar_prefetch=0,
            grid=grid,
            in_specs=in_specs,
            out_specs=pl.BlockSpec((tb, 1), lambda b, s: (b, 0)),
            scratch_shapes=[pltpu.VMEM((tb * C, 1), f32)],
        ),
        compiler_params=pltpu.CompilerParams(
            dimension_semantics=("parallel", "arbitrary"),
            vmem_limit_bytes=vmem_limit,
        ),
        cost_estimate=cost,
    )(img2d, feat, trk2, p1, w_fold)

    return out[:B]


def nflnet_ref(image, features, track, params):
    """Pure-JAX reference mirroring the PyTorch forward (dropout in eval mode)."""
    B, C = image.shape[0], image.shape[1]
    pooled = image.astype(jnp.float32).reshape(B, C, -1).mean(-1)
    img_out = pooled @ params["bb_w"] + params["bb_b"]

    h = features @ params["mlp_w"] + params["mlp_b"]
    mu = h.mean(-1, keepdims=True)
    var = ((h - mu) ** 2).mean(-1, keepdims=True)
    h = (h - mu) / jnp.sqrt(var + LN_EPS)
    h = jnp.maximum(h * params["ln_g"] + params["ln_b"], 0.0)

    cols = jnp.stack([track[:, :, k:k + CONV_OUT_LEN] for k in range(CONV_K)],
                     axis=-1)                                 # (B, 4, 8, 5)
    conv = jnp.einsum("bclk,ck->bl", cols, params["conv_w"]) + params["conv_b"][0]
    t = jnp.maximum(conv @ params["lin2_w"] + params["lin2_b"], 0.0)

    cat = jnp.concatenate([img_out, h, t], axis=1)            # (B, 84)
    return cat @ params["fc_w"] + params["fc_b"]


if __name__ == "__main__":
    key = jax.random.PRNGKey(0)
    k_img, k_feat, k_trk, k_param = jax.random.split(key, 4)

    B, C, H, W = 2, 6, 16, 16     # inp_channels = 3 * 2; small spatial size
    image = jax.random.normal(k_img, (B, C, H, W), jnp.float32)
    features = jax.random.normal(k_feat, (B, N_FEATURES), jnp.float32)
    track = jax.random.normal(k_trk, (B, N_TRACK_CH, N_TRACK_LEN), jnp.float32)

    params = init_params(k_param, inp_channels=C)

    out = nflnet_forward(image, features, track, params)
    out = jax.block_until_ready(out)

    ref = nflnet_ref(image, features, track, params)
    np.testing.assert_allclose(np.asarray(out), np.asarray(ref), rtol=1e-4, atol=1e-4)

    print("KERNEL_OK")
</pallas_src>

<mosaic_0001>
module attributes {stable_mosaic.version = 11 : i64} {
  func.func @nflnet_kernel(%arg0: i32, %arg1: i32, %arg2: memref<12x256xf32, #tpu.memory_space<vmem>>, %arg3: memref<2x18xf32, #tpu.memory_space<vmem>>, %arg4: memref<2x48xf32, #tpu.memory_space<vmem>>, %arg5: memref<73x32xf32, #tpu.memory_space<vmem>>, %arg6: memref<2x12xf32, #tpu.memory_space<vmem>>, %arg7: memref<2x1xf32, #tpu.memory_space<vmem>>, %arg8: memref<12x1xf32, #tpu.memory_space<vmem>>) attributes {dimension_semantics = [#tpu.dimension_semantics<parallel>, #tpu.dimension_semantics<arbitrary>], iteration_bounds = array<i64: 1, 1>, scalar_prefetch = 0 : i64, scratch_operands = 1 : i64, tpu.core_type = #tpu.core_type<tc>, window_params = [{transform_indices = @transform_0, window_bounds = array<i64: 12, 256>}, {transform_indices = @transform_1, window_bounds = array<i64: 2, 18>}, {transform_indices = @transform_2, window_bounds = array<i64: 2, 48>}, {pipeline_mode = #tpu.pipeline_mode<synchronous>, transform_indices = @transform_3, window_bounds = array<i64: 73, 32>}, {pipeline_mode = #tpu.pipeline_mode<synchronous>, transform_indices = @transform_4, window_bounds = array<i64: 2, 12>}, {transform_indices = @transform_5, window_bounds = array<i64: 2, 1>}]} {
    %c0_i32 = arith.constant 0 : i32
    %0 = arith.cmpi eq, %arg1, %c0_i32 : i32
    %1 = arith.extui %0 : i1 to i32
    %c0_i32_0 = arith.constant 0 : i32
    %2 = arith.cmpi ne, %1, %c0_i32_0 : i32
    scf.if %2 {
      %cst_8 = arith.constant 0.000000e+00 : f32
      %12 = vector.broadcast %cst_8 : f32 to vector<12x1xf32>
      %c0_9 = arith.constant 0 : index
      %c0_10 = arith.constant 0 : index
      %13 = vector.load %arg8[%c0_9, %c0_10] : memref<12x1xf32, #tpu.memory_space<vmem>>, vector<12x1xf32>
      tpu.vector_store %arg8[%c0_9, %c0_10], %12 {strides = array<i32>} : memref<12x1xf32, #tpu.memory_space<vmem>>, vector<12x1xf32>,
    } else {
    }
    %c0 = arith.constant 0 : index
    %c0_1 = arith.constant 0 : index
    %3 = vector.load %arg8[%c0, %c0_1] : memref<12x1xf32, #tpu.memory_space<vmem>>, vector<12x1xf32>
    %c0_2 = arith.constant 0 : index
    %c0_3 = arith.constant 0 : index
    %4 = vector.load %arg2[%c0_2, %c0_3] : memref<12x256xf32, #tpu.memory_space<vmem>>, vector<12x256xf32>
    %cst = arith.constant dense<0.000000e+00> : vector<12xf32>
    %5 = vector.multi_reduction <add>, %4, %cst [1] : vector<12x256xf32> to vector<12xf32>
    %6 = vector.shape_cast %5 : vector<12xf32> to vector<12x1xf32>
    %7 = arith.addf %3, %6 : vector<12x1xf32>
    %c0_4 = arith.constant 0 : index
    %c0_5 = arith.constant 0 : index
    %8 = vector.load %arg8[%c0_4, %c0_5] : memref<12x1xf32, #tpu.memory_space<vmem>>, vector<12x1xf32>
    tpu.vector_store %arg8[%c0_4, %c0_5], %7 {strides = array<i32>} : memref<12x1xf32, #tpu.memory_space<vmem>>, vector<12x1xf32>,
    %c0_i32_6 = arith.constant 0 : i32
    %9 = arith.cmpi eq, %arg1, %c0_i32_6 : i32
    %10 = arith.extui %9 : i1 to i32
    %c0_i32_7 = arith.constant 0 : i32
    %11 = arith.cmpi ne, %10, %c0_i32_7 : i32
    scf.if %11 {
      %c0_8 = arith.constant 0 : index
      %c0_9 = arith.constant 0 : index
      %12 = vector.load %arg6[%c0_8, %c0_9] : memref<2x12xf32, #tpu.memory_space<vmem>>, vector<2x12xf32>
      %c0_10 = arith.constant 0 : index
      %c0_11 = arith.constant 0 : index
      %13 = vector.load %arg8[%c0_10, %c0_11] : memref<12x1xf32, #tpu.memory_space<vmem>>, vector<12x1xf32>
      %cst_12 = arith.constant dense<0.000000e+00> : vector<2x1xf32>
      %14 = tpu.matmul %12, %13, %cst_12 {dimension_numbers = #tpu.dot_dimension_numbers<[1], [0], [0], [1], [0, 0, 1, 1], [], []>} : vector<2x12xf32>, vector<12x1xf32>, vector<2x1xf32> -> vector<2x1xf32>
      %c0_13 = arith.constant 0 : index
      %c0_14 = arith.constant 0 : index
      %15 = vector.load %arg3[%c0_13, %c0_14] : memref<2x18xf32, #tpu.memory_space<vmem>>, vector<2x18xf32>
      %c0_15 = arith.constant 0 : index
      %c0_16 = arith.constant 0 : index
      %16 = vector.load %arg5[%c0_15, %c0_16] : memref<73x32xf32, #tpu.memory_space<vmem>>, vector<18x32xf32>
      %cst_17 = arith.constant dense<0.000000e+00> : vector<2x32xf32>
      %17 = tpu.matmul %15, %16, %cst_17 {dimension_numbers = #tpu.dot_dimension_numbers<[1], [0], [0], [1], [0, 0, 1, 1], [], []>} : vector<2x18xf32>, vector<18x32xf32>, vector<2x32xf32> -> vector<2x32xf32>
      %c18 = arith.constant 18 : index
      %c0_18 = arith.constant 0 : index
      %18 = vector.load %arg5[%c18, %c0_18] : memref<73x32xf32, #tpu.memory_space<vmem>>, vector<1x32xf32>
      %19 = vector.broadcast %18 : vector<1x32xf32> to vector<2x32xf32>
      %20 = arith.addf %17, %19 : vector<2x32xf32>
      %cst_19 = arith.constant dense<0.000000e+00> : vector<2xf32>
      %21 = vector.multi_reduction <add>, %20, %cst_19 [1] : vector<2x32xf32> to vector<2xf32>
      %22 = vector.shape_cast %21 : vector<2xf32> to vector<2x1xf32>
      %cst_20 = arith.constant 3.200000e+01 : f32
      %23 = vector.broadcast %cst_20 : f32 to vector<2x1xf32>
      %24 = arith.divf %22, %23 : vector<2x1xf32>
      %25 = vector.broadcast %24 : vector<2x1xf32> to vector<2x32xf32>
      %26 = arith.subf %20, %25 : vector<2x32xf32>
      %27 = arith.mulf %26, %26 : vector<2x32xf32>
      %cst_21 = arith.constant dense<0.000000e+00> : vector<2xf32>
      %28 = vector.multi_reduction <add>, %27, %cst_21 [1] : vector<2x32xf32> to vector<2xf32>
      %29 = vector.shape_cast %28 : vector<2xf32> to vector<2x1xf32>
      %cst_22 = arith.constant 3.200000e+01 : f32
      %30 = vector.broadcast %cst_22 : f32 to vector<2x1xf32>
      %31 = arith.divf %29, %30 : vector<2x1xf32>
      %32 = vector.broadcast %24 : vector<2x1xf32> to vector<2x32xf32>
      %33 = arith.subf %20, %32 : vector<2x32xf32>
      %cst_23 = arith.constant 9.99999974E-6 : f32
      %34 = vector.broadcast %cst_23 : f32 to vector<2x1xf32>
      %35 = arith.addf %31, %34 : vector<2x1xf32>
      %36 = math.rsqrt %35 : vector<2x1xf32>
      %37 = vector.broadcast %36 : vector<2x1xf32> to vector<2x32xf32>
      %38 = arith.mulf %33, %37 : vector<2x32xf32>
      %c19 = arith.constant 19 : index
      %c0_24 = arith.constant 0 : index
      %39 = vector.load %arg5[%c19, %c0_24] : memref<73x32xf32, #tpu.memory_space<vmem>>, vector<1x32xf32>
      %40 = vector.broadcast %39 : vector<1x32xf32> to vector<2x32xf32>
      %41 = arith.mulf %38, %40 : vector<2x32xf32>
      %c20 = arith.constant 20 : index
      %c0_25 = arith.constant 0 : index
      %42 = vector.load %arg5[%c20, %c0_25] : memref<73x32xf32, #tpu.memory_space<vmem>>, vector<1x32xf32>
      %43 = vector.broadcast %42 : vector<1x32xf32> to vector<2x32xf32>
      %44 = arith.addf %41, %43 : vector<2x32xf32>
      %cst_26 = arith.constant 0.000000e+00 : f32
      %45 = vector.broadcast %cst_26 : f32 to vector<2x32xf32>
      %46 = arith.maximumf %44, %45 : vector<2x32xf32>
      %c0_27 = arith.constant 0 : index
      %c0_28 = arith.constant 0 : index
      %47 = vector.load %arg4[%c0_27, %c0_28] : memref<2x48xf32, #tpu.memory_space<vmem>>, vector<2x48xf32>
      %c24 = arith.constant 24 : index
      %c0_29 = arith.constant 0 : index
      %48 = vector.load %arg5[%c24, %c0_29] : memref<73x32xf32, #tpu.memory_space<vmem>>, vector<48x32xf32>
      %cst_30 = arith.constant dense<0.000000e+00> : vector<2x32xf32>
      %49 = tpu.matmul %47, %48, %cst_30 {dimension_numbers = #tpu.dot_dimension_numbers<[1], [0], [0], [1], [0, 0, 1, 1], [], []>} : vector<2x48xf32>, vector<48x32xf32>, vector<2x32xf32> -> vector<2x32xf32>
      %c21 = arith.constant 21 : index
      %c0_31 = arith.constant 0 : index
      %50 = vector.load %arg5[%c21, %c0_31] : memref<73x32xf32, #tpu.memory_space<vmem>>, vector<1x32xf32>
      %51 = vector.broadcast %50 : vector<1x32xf32> to vector<2x32xf32>
      %52 = arith.addf %49, %51 : vector<2x32xf32>
      %cst_32 = arith.constant 0.000000e+00 : f32
      %53 = vector.broadcast %cst_32 : f32 to vector<2x32xf32>
      %54 = arith.maximumf %52, %53 : vector<2x32xf32>
      %c22 = arith.constant 22 : index
      %c0_33 = arith.constant 0 : index
      %55 = vector.load %arg5[%c22, %c0_33] : memref<73x32xf32, #tpu.memory_space<vmem>>, vector<1x32xf32>
      %56 = vector.broadcast %55 : vector<1x32xf32> to vector<2x32xf32>
      %57 = arith.mulf %46, %56 : vector<2x32xf32>
      %cst_34 = arith.constant dense<0.000000e+00> : vector<2xf32>
      %58 = vector.multi_reduction <add>, %57, %cst_34 [1] : vector<2x32xf32> to vector<2xf32>
      %59 = vector.shape_cast %58 : vector<2xf32> to vector<2x1xf32>
      %c23 = arith.constant 23 : index
      %c0_35 = arith.constant 0 : index
      %60 = vector.load %arg5[%c23, %c0_35] : memref<73x32xf32, #tpu.memory_space<vmem>>, vector<1x32xf32>
      %61 = vector.broadcast %60 : vector<1x32xf32> to vector<2x32xf32>
      %62 = arith.mulf %54, %61 : vector<2x32xf32>
      %cst_36 = arith.constant dense<0.000000e+00> : vector<2xf32>
      %63 = vector.multi_reduction <add>, %62, %cst_36 [1] : vector<2x32xf32> to vector<2xf32>
      %64 = vector.shape_cast %63 : vector<2xf32> to vector<2x1xf32>
      %c72 = arith.constant 72 : index
      %c0_37 = arith.constant 0 : index
      %65 = vector.load %arg5[%c72, %c0_37] : memref<73x32xf32, #tpu.memory_space<vmem>>, vector<1x1xf32>
      %66 = arith.addf %14, %59 : vector<2x1xf32>
      %67 = arith.addf %66, %64 : vector<2x1xf32>
      %68 = vector.broadcast %65 : vector<1x1xf32> to vector<2x1xf32>
      %69 = arith.addf %67, %68 : vector<2x1xf32>
      %c0_38 = arith.constant 0 : index
      %c0_39 = arith.constant 0 : index
      %70 = vector.load %arg7[%c0_38, %c0_39] : memref<2x1xf32, #tpu.memory_space<vmem>>, vector<2x1xf32>
      tpu.vector_store %arg7[%c0_38, %c0_39], %69 {strides = array<i32>} : memref<2x1xf32, #tpu.memory_space<vmem>>, vector<2x1xf32>,
    } else {
    }
    return
  }
  func.func @transform_0(%arg0: i32, %arg1: i32) -> (i32, i32) {
    %c0_i32 = arith.constant 0 : i32
    return %arg0, %arg1 : i32, i32
  }
  func.func @transform_1(%arg0: i32, %arg1: i32) -> (i32, i32) {
    %c0_i32 = arith.constant 0 : i32
    %c0_i32_0 = arith.constant 0 : i32
    return %arg0, %c0_i32 : i32, i32
  }
  func.func @transform_2(%arg0: i32, %arg1: i32) -> (i32, i32) {
    %c0_i32 = arith.constant 0 : i32
    %c0_i32_0 = arith.constant 0 : i32
    return %arg0, %c0_i32 : i32, i32
  }
  func.func @transform_3(%arg0: i32, %arg1: i32) -> (i32, i32) {
    %c0_i32 = arith.constant 0 : i32
    %c0_i32_0 = arith.constant 0 : i32
    %c0_i32_1 = arith.constant 0 : i32
    return %c0_i32, %c0_i32_0 : i32, i32
  }
  func.func @transform_4(%arg0: i32, %arg1: i32) -> (i32, i32) {
    %c0_i32 = arith.constant 0 : i32
    %c0_i32_0 = arith.constant 0 : i32
    %c0_i32_1 = arith.constant 0 : i32
    return %c0_i32, %c0_i32_0 : i32, i32
  }
  func.func @transform_5(%arg0: i32, %arg1: i32) -> (i32, i32) {
    %c0_i32 = arith.constant 0 : i32
    %c0_i32_0 = arith.constant 0 : i32
    return %arg0, %c0_i32 : i32, i32
  }
}

</mosaic_0001>

<bundles_post_ra>
// kernel: tpu_custom_call.1
= control target key start
LH: loop header
LB: loop body
LE: loop exit
PB: predicated region body
PF: predicated region fallthrough
CT: control target
= control target key end

     0   :  { %v444_v0 = vmov 0.0|0.0   ;;  %vm445_vm0 = vmmov 0   ;;  %v446_v3 = vmov 0.0   ;;  %vm68_vm1 = vcmask 1041408   ;;  %s560_s3 = inlined_call_operand.vmem [shape: f32[73,32], index: 3, kind: input, shape index: {}]   ;;  %s561_s1 = inlined_call_operand.vmem [shape: f32[2,18], index: 1, kind: input, shape index: {}]   ;;  %s562_s0 = inlined_call_operand.vmem [shape: f32[12,256], index: 0, kind: input, shape index: {}]   ;;  %s563_s2 = inlined_call_operand.vmem [shape: f32[2,48], index: 2, kind: input, shape index: {}]   ;;  %s564_s4 = inlined_call_operand.vmem [shape: f32[2,12], index: 4, kind: input, shape index: {}]   ;;  %s565_s5 = inlined_call_operand.vmem [shape: f32[2,1], index: 5, kind: output, shape index: {}]  }
   0x1   :  { %422 = vmatprep.subr.bf16.mxu0 %v444_v0  ;;  %v56_v1 = vld [vmem:[%s560_s3] sm:$0xff]  ;;  %v57_v2 = vld [vmem:[%s560_s3 + $0x8] sm:$0xff]  ;;  %397 = vmatprep.mubr.msk.f32.mxu0 %vm445_vm0, %v446_v3  ;;  %v58_v5 = vld [vmem:[%s560_s3 + $0x10] sm:$0x3]  ;;  %vm64_vm2 = vcmask 146432   ;;  %vm37_vm3 = vcmask 1043456  }
   0x2   :  { %v423_v4 = vpack.c.bf16 %v57_v2, %v56_v1  ;;  %425 = vmatprep.subr.bf16.mxu1 %v444_v0  ;;  %412 = vmatprep.mubr.msk.f32.mxu1 %vm445_vm0, %v446_v3  ;;  %v55_v6 = vld [vmem:[%s561_s1] sm:$0x3]  ;;  %v171_v7 = vld [vmem:[%s560_s3 + $0x18] sm:$0xff]  ;;  %v173_v9 = vld [vmem:[%s560_s3 + $0x28] sm:$0xff]  ;;  %vm182_vm4 = vcmask 392192   ;;  %vm142_vm5 = vcmask 254976  }
   0x3   :  { %v172_v8 = vld [vmem:[%s560_s3 + $0x20] sm:$0xff]  ;;  %v31_v11 = vld [vmem:[%s562_s0 + $0x8] sm:$0xff]  ;;  %v32_v12 = vld [vmem:[%s562_s0 + $0x10] sm:$0xf]  ;;  %vm24_vm6 = vcmask 7168   ;;  %vm26_vm7 = vcmask 3072  }
   0x4   :  { %424 = vmatpush3.bf16.msra.mxu0 %v423_v4  ;;  %v30_v10 = vld [vmem:[%s562_s0] sm:$0xff]  ;;  %v426_v13 = vpack.c.bf16 %v172_v8, %v171_v7  ;;  %v33_v15 = vld [vmem:[%s562_s0 + $0x18] sm:$0xf]  ;;  %v38_v16 = vsel %vm37_vm3, %v32_v12, 0.0  ;;  %v174_v17 = vld [vmem:[%s560_s3 + $0x30] sm:$0xff]  ;;  %25 = vst.msk [vmem:[#allocation2] sm:$0xff] %vm24_vm6, %v446_v3 }
   0x5   :  { %395 = vmatprep.subr.mxu0 %v446_v3  ;;  %v34_v14 = vadd.f32 %v31_v11, %v30_v10  ;;  %v39_v18 = vsel %vm37_vm3, %v33_v15, 0.0  ;;  %v429_v19 = vpack.c.bf16 %v174_v17, %v173_v9  ;;  %v175_v21 = vld [vmem:[%s560_s3 + $0x38] sm:$0xff]  ;;  %v176_v22 = vld [vmem:[%s560_s3 + $0x40] sm:$0xff]  ;;  %v365_v25 = vld [vmem:[%s560_s3 + $0x12] ss:$0 sm:$0xff]  ;;  %vm447_vm8 = vmmov 1  }
   0x6   :  { %427 = vmatpush3.bf16.msra.mxu1 %v426_v13  ;;  %v40_v20 = vadd.f32 %v39_v18, %v38_v16  ;;  %v432_v23 = vpack.c.bf16 %v176_v22, %v175_v21  ;;  %v170_v24 = vld [vmem:[%s563_s2] sm:$0x3]  ;;  %27 = vst.msk [vmem:[#allocation2 + $0x8] sm:$0xf] %vm26_vm7, %v446_v3  ;;  %vm436_vm9 = vmpackc.low %vm37_vm3, %vm447_vm8  ;;  %vm276_vm10 = vcmask 97280   ;;  %vm359_vm11 = vcmask 1024  }
   0x7   :  { %35 = vadd.xlane.f32.xlu0 %v34_v14  ;;  %428 = vmatprep.subr.bf16.mxu1 %v444_v0  ;;  %v52_v39 = vld [vmem:[%s564_s4] sm:$0x3]  ;;  %v370_v47 = vld [vmem:[%s560_s3 + $0x15] ss:$0 sm:$0xff]  ;;  %v373_v50 = vld [vmem:[%s560_s3 + $0x17] ss:$0 sm:$0xff] }
   0x8   :  { %396 = vmatpush3.msk.msra.mxu0 %vm68_vm1, %v58_v5  ;;  %v368_v59 = vld [vmem:[%s560_s3 + $0x13] ss:$0 sm:$0xff]  ;;  %v369_v61 = vld [vmem:[%s560_s3 + $0x14] ss:$0 sm:$0xff]  ;;  %v376_v7 = vld [vmem:[%s560_s3 + $0x48] ss:$0 sm:$0xff] }
   0x9   :  { %398 = vmatmul.mubr.msk.f32.vlgmr.msra.gmra.mrb[0].mxu0 %vm64_vm2, %v55_v6  ;;  %434 = vmatprep.subr.bf16.mxu0 %v444_v0 }
   0xa   :  { %419 = vmatprep.mubr.msk.f32.mxu0 %vm445_vm0, %v446_v3  ;;  %430 = vmatpush3.bf16.msra.mxu1 %v429_v19 }
   0xb   :  { %41 = vadd.xlane.f32.xlu0 %v40_v20  ;;  %431 = vmatprep.subr.bf16.mxu1 %v444_v0  ;;  %v28_v32 = vld [vmem:[#allocation2] sm:$0xff]  ;;  %v372_v0 = vld [vmem:[%s560_s3 + $0x16] ss:$0 sm:$0xff] }
   0xd   :  { %v29_v33 = vld [vmem:[#allocation2 + $0x8] sm:$0xf] }
   0xe   :  { %433 = vmatpush3.bf16.msra.mxu1 %v432_v23 }
  0x11   :  { %413 = vmatmul.mubr.msk.f32.vlgmr.msra.gmra.mrb[0].mxu1 %vm182_vm4, %v170_v24 }
  0x94   :  { %v36_v30 = vpop.xlane.xlu0 %35 }
  0x95   :  { %v43_v34 = vadd.f32 %v36_v30, %v28_v32 }
  0x97   :  { %46 = vst.msk [vmem:[#allocation2] sm:$0xff] %vm24_vm6, %v43_v34 }
  0x98   :  { %v42_v31 = vpop.xlane.xlu0 %41 }
  0x99   :  { %v44_v35 = vadd.f32 %v42_v31, %v29_v33 }
  0x9b   :  { %48 = vst.msk [vmem:[#allocation2 + $0x8] sm:$0xf] %vm26_vm7, %v44_v35 }
  0x9e   :  { %v53_v36 = vld [vmem:[#allocation2] sm:$0xff] }
  0xa2   :  { %v54_v37 = vld [vmem:[#allocation2 + $0x8] sm:$0xf] }
  0xa3   :  { %v435_v38 = vpack.c.bf16 %v54_v37, %v53_v36 }
  0xa5   :  { %437 = vmatpush3.bf16.msk.msra.mxu0 %vm436_vm9, %v435_v38 }
  0xa8   :  { %420 = vmatmul.mubr.msk.f32.vlgmr.msra.gmra.mrb[2].mxu0 %vm276_vm10, %v52_v39 }
  0xdc   :  { %v138_v26 = vpop.f32.mrb[0].mxu0 }
  0xdd   :  { %v139_v27 = vadd.f32 %v365_v25, %v138_v26  ;;  %v399_v28 = vpop.f32.mrb[1].mxu0 }
  0xdf   :  { %v143_v29 = vsel %vm142_vm5, %v139_v27, 0.0 }
  0xe0   :  { %144 = vadd.xlane.f32.xlu1 %v143_v29 }
  0xe4   :  { %v252_v45 = vpop.f32.mrb[0].mxu1 }
  0xe5   :  { %v414_v46 = vpop.f32.mrb[1].mxu1  ;;  %v253_v48 = vadd.f32 %v370_v47, %v252_v45 }
  0xe7   :  { %v256_v49 = vmax.f32 %v253_v48, 0.0 }
  0xe9   :  { %v271_v51 = vmul.f32 %v373_v50, %v256_v49 }
  0xeb   :  { %v272_v52 = vsel %vm142_vm5, %v271_v51, 0.0 }
 0x16d   :  { %v145_v40 = vpop.xlane.xlu1 %144 }
 0x16e   :  { %v147_v41 = vmul.f32 0.03125, %v145_v40 }
 0x170   :  { %v148_v42 = vsub.f32 %v139_v27, %v147_v41 }
 0x172   :  { %v149_v43 = vmul.f32 %v148_v42, %v148_v42 }
 0x174   :  { %v150_v44 = vsel %vm142_vm5, %v149_v43, 0.0 }
 0x175   :  { %151 = vadd.xlane.f32.xlu1 %v150_v44 }
 0x179   :  { %273 = vadd.xlane.f32.xlu1 %v272_v52 }
 0x17b   :  { %v349_v53 = vpop.f32.mrb[2].mxu0 }
 0x17c   :  { %v421_v54 = vpop.f32.mrb[3].mxu0 }
 0x202   :  { %v152_v55 = vpop.xlane.xlu1 %151 }
 0x203   :  { %v153_v56 = vmul.f32 0.03125, %v152_v55 }
 0x205   :  { %v154_v57 = vadd.f32 1e-05, %v153_v56 }
 0x206   :  { %v274_v5 = vpop.xlane.xlu1 %273 }
 0x207   :  { %442 = vrsqrt.f32 %v154_v57 }
 0x211   :  { %v443_v58 = vpop.eup %442 }
 0x212   :  { %v156_v60 = vmul.f32 %v443_v58, %v148_v42 }
 0x214   :  { %v162_v62 = vmul.f32 %v368_v59, %v156_v60 }
 0x216   :  { %v168_v63 = vadd.f32 %v369_v61, %v162_v62 }
 0x218   :  { %v169_v1 = vmax.f32 %v168_v63, 0.0 }
 0x21a   :  { %v262_v2 = vmul.f32 %v372_v0, %v169_v1 }
 0x21c   :  { %v263_v3 = vsel %vm142_vm5, %v262_v2, 0.0 }
 0x21d   :  { %264 = vadd.xlane.f32.xlu0 %v263_v3 }
 0x2aa   :  { %v265_v4 = vpop.xlane.xlu0 %264 }
 0x2ab   :  { %v350_v6 = vadd.f32 %v349_v53, %v265_v4 }
 0x2ad   :  { %v353_v8 = vadd.f32 %v350_v6, %v274_v5 }
 0x2af   :  { %v358_v9 = vadd.f32 %v376_v7, %v353_v8 }
 0x2b1   :  { %360 = vst.msk [vmem:[%s565_s5] sm:$0x3] %vm359_vm11, %v358_v9 }

</bundles_post_ra>
